<compile_context>
chip_gen: v6e
topology: v6e:2x2x1
jax: 0.10.0
libtpu: 0.0.40
codegen_flags: <defaults>
</compile_context>

<pallas_src>
import jax
import jax.numpy as jnp
from jax.experimental import pallas as pl
from jax.experimental.pallas import tpu as pltpu

BN_EPS = 1e-5


def _vmem_capacity_bytes():
    try:
        info = pltpu.get_tpu_info()
        return int(getattr(info, "vmem_capacity_bytes", 64 << 20))
    except Exception:
        return 64 << 20


def _pick_b_tile(N, C, L, vmem_cap, max_tile=8):
    """Largest divisor of N that (a) keeps >= 4 grid steps when possible (so both
    v7x TensorCores get >= 2 pipelined steps), (b) stays inside a conservative
    per-step activation budget derived from this generation's VMEM capacity,
    and (c) bounds the in-kernel static unroll."""
    sample_bytes = C * L * 4
    budget = max(sample_bytes, min(1 << 20, vmem_cap // 64))
    min_chunks = min(4, N)
    best = 1
    for b in range(1, min(N, max_tile) + 1):
        if N % b == 0 and (N // b) >= min_chunks and b * sample_bytes <= budget:
            best = b
    return best


def _make_kernel(C, L, K, b_tile):
    PAD = K // 2
    shifts = [k - PAD for k in range(K)]   # e.g. [-1, 0, +1] for K=3

    def kernel(x_ref, w_ref, t_ref, o_ref):
        # Boundary masks: plain lane-index compares (no modulo), built once per
        # grid step and reused by both convs and every sample in the block.
        pos = jax.lax.broadcasted_iota(jnp.int32, (C, L), 1)
        masks = {s: jnp.logical_and(pos + s >= 0, pos + s < L)
                 for s in shifts if s != 0}

        w1 = w_ref[0]                      # (C, K*C), BN scale pre-folded
        w2 = w_ref[1]
        t1 = t_ref[:, 0:1]                 # (C, 1) additive shifts (bias+BN folded)
        t2 = t_ref[:, 1:2]

        def conv1d_same(h, w_packed):
            # Stack the K shifted/masked copies -> (K*C, L); one MXU matmul.
            taps = []
            for s in shifts:
                if s == 0:
                    taps.append(h)
                else:
                    h_sh = pltpu.roll(h, shift=(-s) % L, axis=1)
                    taps.append(jnp.where(masks[s], h_sh, 0.0))
            h_stk = jnp.concatenate(taps, axis=0)            # (K*C, L)
            return jnp.dot(w_packed, h_stk,
                           preferred_element_type=jnp.float32)   # (C, L)

        # Static unroll over the (small) per-step batch chunk; each sample is a
        # lane-dense (C, L) tile.
        for i in range(b_tile):
            h = conv1d_same(x_ref[i], w1)                    # conv1 (* bn1 scale)
            h = jnp.maximum(h + t1, 0.0)                     # bn1 shift + relu
            o = conv1d_same(h, w2) + t2                      # conv2 (* bn2 scale) + shift
            o_ref[i] = jnp.maximum(o + x_ref[i], 0.0)        # residual (re-read) + relu

    return kernel


def residual_block_forward(x, params, b_tile=None):
    """x: (N, C, L) float32. params: PyTorch-convention parameter dict."""
    N, C, L = x.shape
    K = params["w1"].shape[-1]

    cap = _vmem_capacity_bytes()
    if b_tile is None:
        b_tile = _pick_b_tile(N, C, L, cap)
    assert N % b_tile == 0, "b_tile must divide N"
    n_chunks = N // b_tile

    # Fold eval-mode BatchNorm and the conv bias:
    #   bn(conv_w(x) + b) = conv_{scale*w}(x) + (be - m*scale + scale*b)
    def fold(gamma, beta, mean, var, bias, w):
        scale = gamma / jnp.sqrt(var + BN_EPS)
        shift = beta - mean * scale + scale * bias
        return scale[:, None, None] * w, shift

    w1s, t1 = fold(params["g1"], params["be1"], params["m1"], params["v1"],
                   params["b1"], params["w1"])
    w2s, t2 = fold(params["g2"], params["be2"], params["m2"], params["v2"],
                   params["b2"], params["w2"])

    # Pack conv weights (Cout, Cin, K) -> (Cout, K*Cin); tap-major to match the
    # kernel's activation stacking order.
    def pack_w(w):
        return jnp.transpose(w, (0, 2, 1)).reshape(C, K * C)

    w_all = jnp.stack([pack_w(w1s), pack_w(w2s)], 0).astype(jnp.float32)  # (2, C, K*C)
    tvec = jnp.stack([t1, t2], axis=1).astype(jnp.float32)                # (C, 2)

    kernel = _make_kernel(C, L, K, b_tile)

    grid_spec = pltpu.PrefetchScalarGridSpec(
        num_scalar_prefetch=0,
        grid=(n_chunks,),
        in_specs=[
            pl.BlockSpec((b_tile, C, L), lambda n: (n, 0, 0)),    # activations (native layout)
            pl.BlockSpec((2, C, K * C), lambda n: (0, 0, 0)),     # packed scaled weights (resident)
            pl.BlockSpec((C, 2), lambda n: (0, 0)),               # packed additive shifts
        ],
        out_specs=pl.BlockSpec((b_tile, C, L), lambda n: (n, 0, 0)),
    )

    # Generation-aware scoped-VMEM budget: per step we hold x/out tiles (double
    # buffered), the two (K*C, L) tap slabs and the h/o intermediates.
    tile_bytes = b_tile * C * L * 4
    param_bytes = (2 * C * K * C + 2 * C) * 4
    needed = 16 * tile_bytes + 4 * param_bytes + (2 << 20)
    vmem_bytes = int(min(max(needed, 8 << 20), max(cap // 2, 16 << 20)))

    cost = pl.CostEstimate(
        flops=int(2 * 2 * C * (K * C) * N * L),          # two fused-tap matmuls
        transcendentals=0,
        bytes_accessed=int(2 * N * C * L * 4 + 2 * param_bytes),
    )

    out = pl.pallas_call(
        kernel,
        out_shape=jax.ShapeDtypeStruct((N, C, L), jnp.float32),
        grid_spec=grid_spec,
        compiler_params=pltpu.CompilerParams(
            dimension_semantics=("parallel",),
            vmem_limit_bytes=vmem_bytes,
        ),
        cost_estimate=cost,
    )(x.astype(jnp.float32), w_all, tvec)

    return out


def residual_block_reference(x, params):
    """Plain-JAX reference (lax conv) for correctness checking."""
    C = x.shape[1]

    def conv(y, w, b):
        out = jax.lax.conv_general_dilated(
            y, w, window_strides=(1,), padding=((w.shape[-1] // 2,) * 2,),
            dimension_numbers=("NCH", "OIH", "NCH"))
        return out + b.reshape(1, C, 1)

    def bn(y, gamma, beta, mean, var):
        return (y - mean.reshape(1, C, 1)) / jnp.sqrt(var.reshape(1, C, 1) + BN_EPS) \
            * gamma.reshape(1, C, 1) + beta.reshape(1, C, 1)

    h = jnp.maximum(bn(conv(x, params["w1"], params["b1"]),
                       params["g1"], params["be1"], params["m1"], params["v1"]), 0.0)
    o = bn(conv(h, params["w2"], params["b2"]),
           params["g2"], params["be2"], params["m2"], params["v2"])
    return jnp.maximum(o + x, 0.0)


if __name__ == "__main__":
    N, C, L, K = 4, 8, 128, 3

    key = jax.random.PRNGKey(0)
    ks = jax.random.split(key, 9)
    params = dict(
        w1=0.1 * jax.random.normal(ks[0], (C, C, K), jnp.float32),
        b1=0.1 * jax.random.normal(ks[1], (C,), jnp.float32),
        g1=1.0 + 0.1 * jax.random.normal(ks[2], (C,), jnp.float32),
        be1=0.1 * jax.random.normal(ks[3], (C,), jnp.float32),
        m1=jnp.zeros((C,), jnp.float32),          # running_mean init
        v1=jnp.ones((C,), jnp.float32),           # running_var init
        w2=0.1 * jax.random.normal(ks[4], (C, C, K), jnp.float32),
        b2=0.1 * jax.random.normal(ks[5], (C,), jnp.float32),
        g2=1.0 + 0.1 * jax.random.normal(ks[6], (C,), jnp.float32),
        be2=0.1 * jax.random.normal(ks[7], (C,), jnp.float32),
        m2=jnp.zeros((C,), jnp.float32),
        v2=jnp.ones((C,), jnp.float32),
    )
    x = jax.random.normal(ks[8], (N, C, L), jnp.float32)

    out = jax.block_until_ready(residual_block_forward(x, params))
    ref = jax.block_until_ready(residual_block_reference(x, params))

    assert out.shape == (N, C, L) and out.dtype == jnp.float32
    assert jnp.allclose(out, ref, atol=1e-4, rtol=1e-4), \
        f"max abs err {jnp.max(jnp.abs(out - ref))}"
    print("KERNEL_OK")
</pallas_src>

<mosaic_0001>
module attributes {stable_mosaic.version = 11 : i64} {
  func.func @kernel(%arg0: i32, %arg1: memref<1x8x128xf32, #tpu.memory_space<vmem>>, %arg2: memref<2x8x24xf32, #tpu.memory_space<vmem>>, %arg3: memref<8x2xf32, #tpu.memory_space<vmem>>, %arg4: memref<1x8x128xf32, #tpu.memory_space<vmem>>) attributes {dimension_semantics = [#tpu.dimension_semantics<parallel>], iteration_bounds = array<i64: 4>, scalar_prefetch = 0 : i64, scratch_operands = 0 : i64, tpu.core_type = #tpu.core_type<tc>, window_params = [{transform_indices = @transform_0, window_bounds = array<i64: 1, 8, 128>}, {pipeline_mode = #tpu.pipeline_mode<synchronous>, transform_indices = @transform_1, window_bounds = array<i64: 2, 8, 24>}, {pipeline_mode = #tpu.pipeline_mode<synchronous>, transform_indices = @transform_2, window_bounds = array<i64: 8, 2>}, {transform_indices = @transform_3, window_bounds = array<i64: 1, 8, 128>}]} {
    %0 = tpu.iota {dimensions = array<i32: 1>} : vector<8x128xi32>
    %c-1_i32 = arith.constant -1 : i32
    %1 = vector.broadcast %c-1_i32 : i32 to vector<8x128xi32>
    %2 = arith.addi %0, %1 : vector<8x128xi32>
    %c0_i32 = arith.constant 0 : i32
    %3 = vector.broadcast %c0_i32 : i32 to vector<8x128xi32>
    %4 = arith.cmpi sge, %2, %3 : vector<8x128xi32>
    %c-1_i32_0 = arith.constant -1 : i32
    %5 = vector.broadcast %c-1_i32_0 : i32 to vector<8x128xi32>
    %6 = arith.addi %0, %5 : vector<8x128xi32>
    %c128_i32 = arith.constant 128 : i32
    %7 = vector.broadcast %c128_i32 : i32 to vector<8x128xi32>
    %8 = arith.cmpi slt, %6, %7 : vector<8x128xi32>
    %9 = arith.andi %4, %8 : vector<8x128xi1>
    %c1_i32 = arith.constant 1 : i32
    %10 = vector.broadcast %c1_i32 : i32 to vector<8x128xi32>
    %11 = arith.addi %0, %10 : vector<8x128xi32>
    %c0_i32_1 = arith.constant 0 : i32
    %12 = vector.broadcast %c0_i32_1 : i32 to vector<8x128xi32>
    %13 = arith.cmpi sge, %11, %12 : vector<8x128xi32>
    %c1_i32_2 = arith.constant 1 : i32
    %14 = vector.broadcast %c1_i32_2 : i32 to vector<8x128xi32>
    %15 = arith.addi %0, %14 : vector<8x128xi32>
    %c128_i32_3 = arith.constant 128 : i32
    %16 = vector.broadcast %c128_i32_3 : i32 to vector<8x128xi32>
    %17 = arith.cmpi slt, %15, %16 : vector<8x128xi32>
    %18 = arith.andi %13, %17 : vector<8x128xi1>
    %c0 = arith.constant 0 : index
    %c0_4 = arith.constant 0 : index
    %c0_5 = arith.constant 0 : index
    %19 = vector.load %arg2[%c0, %c0_4, %c0_5] : memref<2x8x24xf32, #tpu.memory_space<vmem>>, vector<1x8x24xf32>
    %20 = vector.shape_cast %19 : vector<1x8x24xf32> to vector<8x24xf32>
    %c1 = arith.constant 1 : index
    %c0_6 = arith.constant 0 : index
    %c0_7 = arith.constant 0 : index
    %21 = vector.load %arg2[%c1, %c0_6, %c0_7] : memref<2x8x24xf32, #tpu.memory_space<vmem>>, vector<1x8x24xf32>
    %22 = vector.shape_cast %21 : vector<1x8x24xf32> to vector<8x24xf32>
    %c0_8 = arith.constant 0 : index
    %c0_9 = arith.constant 0 : index
    %23 = vector.load %arg3[%c0_8, %c0_9] : memref<8x2xf32, #tpu.memory_space<vmem>>, vector<8x1xf32>
    %c0_10 = arith.constant 0 : index
    %c1_11 = arith.constant 1 : index
    %24 = vector.load %arg3[%c0_10, %c1_11] : memref<8x2xf32, #tpu.memory_space<vmem>>, vector<8x1xf32>
    %c0_12 = arith.constant 0 : index
    %c0_13 = arith.constant 0 : index
    %c0_14 = arith.constant 0 : index
    %25 = vector.load %arg1[%c0_12, %c0_13, %c0_14] : memref<1x8x128xf32, #tpu.memory_space<vmem>>, vector<1x8x128xf32>
    %26 = vector.shape_cast %25 : vector<1x8x128xf32> to vector<8x128xf32>
    %c1_i32_15 = arith.constant 1 : i32
    %27 = tpu.dynamic_rotate %26 by %c1_i32_15 dim 1 : vector<8x128xf32>, i32 -> vector<8x128xf32>
    %cst = arith.constant 0.000000e+00 : f32
    %28 = vector.broadcast %cst : f32 to vector<8x128xf32>
    %29 = arith.select %9, %27, %28 : vector<8x128xi1>, vector<8x128xf32>
    %c127_i32 = arith.constant 127 : i32
    %30 = tpu.dynamic_rotate %26 by %c127_i32 dim 1 : vector<8x128xf32>, i32 -> vector<8x128xf32>
    %cst_16 = arith.constant 0.000000e+00 : f32
    %31 = vector.broadcast %cst_16 : f32 to vector<8x128xf32>
    %32 = arith.select %18, %30, %31 : vector<8x128xi1>, vector<8x128xf32>
    %33 = tpu.concatenate %29, %26, %32 in 0 : vector<8x128xf32>, vector<8x128xf32>, vector<8x128xf32> -> vector<24x128xf32>
    %cst_17 = arith.constant dense<0.000000e+00> : vector<8x128xf32>
    %34 = tpu.matmul %20, %33, %cst_17 {dimension_numbers = #tpu.dot_dimension_numbers<[1], [0], [0], [1], [0, 0, 1, 1], [], []>} : vector<8x24xf32>, vector<24x128xf32>, vector<8x128xf32> -> vector<8x128xf32>
    %35 = vector.broadcast %23 : vector<8x1xf32> to vector<8x128xf32>
    %36 = arith.addf %34, %35 : vector<8x128xf32>
    %cst_18 = arith.constant 0.000000e+00 : f32
    %37 = vector.broadcast %cst_18 : f32 to vector<8x128xf32>
    %38 = arith.maximumf %36, %37 : vector<8x128xf32>
    %c1_i32_19 = arith.constant 1 : i32
    %39 = tpu.dynamic_rotate %38 by %c1_i32_19 dim 1 : vector<8x128xf32>, i32 -> vector<8x128xf32>
    %cst_20 = arith.constant 0.000000e+00 : f32
    %40 = vector.broadcast %cst_20 : f32 to vector<8x128xf32>
    %41 = arith.select %9, %39, %40 : vector<8x128xi1>, vector<8x128xf32>
    %c127_i32_21 = arith.constant 127 : i32
    %42 = tpu.dynamic_rotate %38 by %c127_i32_21 dim 1 : vector<8x128xf32>, i32 -> vector<8x128xf32>
    %cst_22 = arith.constant 0.000000e+00 : f32
    %43 = vector.broadcast %cst_22 : f32 to vector<8x128xf32>
    %44 = arith.select %18, %42, %43 : vector<8x128xi1>, vector<8x128xf32>
    %45 = tpu.concatenate %41, %38, %44 in 0 : vector<8x128xf32>, vector<8x128xf32>, vector<8x128xf32> -> vector<24x128xf32>
    %cst_23 = arith.constant dense<0.000000e+00> : vector<8x128xf32>
    %46 = tpu.matmul %22, %45, %cst_23 {dimension_numbers = #tpu.dot_dimension_numbers<[1], [0], [0], [1], [0, 0, 1, 1], [], []>} : vector<8x24xf32>, vector<24x128xf32>, vector<8x128xf32> -> vector<8x128xf32>
    %47 = vector.broadcast %24 : vector<8x1xf32> to vector<8x128xf32>
    %48 = arith.addf %46, %47 : vector<8x128xf32>
    %c0_24 = arith.constant 0 : index
    %c0_25 = arith.constant 0 : index
    %c0_26 = arith.constant 0 : index
    %49 = vector.load %arg1[%c0_24, %c0_25, %c0_26] : memref<1x8x128xf32, #tpu.memory_space<vmem>>, vector<1x8x128xf32>
    %50 = vector.shape_cast %49 : vector<1x8x128xf32> to vector<8x128xf32>
    %51 = arith.addf %48, %50 : vector<8x128xf32>
    %cst_27 = arith.constant 0.000000e+00 : f32
    %52 = vector.broadcast %cst_27 : f32 to vector<8x128xf32>
    %53 = arith.maximumf %51, %52 : vector<8x128xf32>
    %c0_28 = arith.constant 0 : index
    %c0_29 = arith.constant 0 : index
    %c0_30 = arith.constant 0 : index
    %54 = vector.load %arg4[%c0_28, %c0_29, %c0_30] : memref<1x8x128xf32, #tpu.memory_space<vmem>>, vector<1x8x128xf32>
    %55 = vector.shape_cast %54 : vector<1x8x128xf32> to vector<8x128xf32>
    %56 = vector.shape_cast %53 : vector<8x128xf32> to vector<1x8x128xf32>
    tpu.vector_store %arg4[%c0_28, %c0_29, %c0_30], %56 {strides = array<i32>} : memref<1x8x128xf32, #tpu.memory_space<vmem>>, vector<1x8x128xf32>,
    return
  }
  func.func @transform_0(%arg0: i32) -> (i32, i32, i32) {
    %c0_i32 = arith.constant 0 : i32
    %c0_i32_0 = arith.constant 0 : i32
    %c0_i32_1 = arith.constant 0 : i32
    return %arg0, %c0_i32, %c0_i32_0 : i32, i32, i32
  }
  func.func @transform_1(%arg0: i32) -> (i32, i32, i32) {
    %c0_i32 = arith.constant 0 : i32
    %c0_i32_0 = arith.constant 0 : i32
    %c0_i32_1 = arith.constant 0 : i32
    %c0_i32_2 = arith.constant 0 : i32
    return %c0_i32, %c0_i32_0, %c0_i32_1 : i32, i32, i32
  }
  func.func @transform_2(%arg0: i32) -> (i32, i32) {
    %c0_i32 = arith.constant 0 : i32
    %c0_i32_0 = arith.constant 0 : i32
    %c0_i32_1 = arith.constant 0 : i32
    return %c0_i32, %c0_i32_0 : i32, i32
  }
  func.func @transform_3(%arg0: i32) -> (i32, i32, i32) {
    %c0_i32 = arith.constant 0 : i32
    %c0_i32_0 = arith.constant 0 : i32
    %c0_i32_1 = arith.constant 0 : i32
    return %arg0, %c0_i32, %c0_i32_0 : i32, i32, i32
  }
}

</mosaic_0001>

<bundles_post_ra>
// kernel: tpu_custom_call.1
= control target key start
LH: loop header
LB: loop body
LE: loop exit
PB: predicated region body
PF: predicated region fallthrough
CT: control target
= control target key end

     0   :  { %8 = vsyncpa [#allocation3], 0  ;;  %s918_s0 = inlined_call_operand.hbm [shape: f32[4,8,128], index: 0, kind: input, shape index: {}]   ;;  %s919_s1 = inlined_call_operand.hbm [shape: f32[2,8,24], index: 1, kind: input, shape index: {}]   ;;  %s920_s2 = inlined_call_operand.vmem [shape: f32[8,2], index: 2, kind: input, shape index: {}]   ;;  %s921_s3 = inlined_call_operand.hbm [shape: f32[4,8,128], index: 3, kind: output, shape index: {}]  }
   0x1   :  { %10 = vsyncpa [#allocation3 + $0x1], 0 }
   0x2   :  { %11 = vsyncpa [#allocation6], 0 }
   0x3   :  { %12 = vsyncpa [#allocation4], 0 }
   0x4   :  { %14 = vsyncpa [#allocation4 + $0x1], 0  ;;  %s751_s12 = smov 0   ;;  %s753_s13 = smov 0  }
   0x5   :  { %s755_s14 = smov 0   ;;  %s757_s15 = smov 0  }
   0x6 LB: > { %s772_s16 = sadd.s32 4294967295, %s718_s15   ;;  %s482_s17 = sadd.s32 4294967294, %s718_s15   ;;  %s718_s15 = sphi %s757_s15, %s942_s15   ;;  %s714_s14 = sphi %s755_s14, %s941_s14   ;;  %s710_s13 = sphi %s753_s13, %s940_s13   ;;  %s706_s12 = sphi %s751_s12, %s939_s12  }
   0x7   : > { %p40_p0 = scmp.ne.s32.totalorder %s710_s13, %s706_s12  ;;  %p922_p1 = scmp.eq.s32.totalorder %s772_s16, 0 }
   0x8   : > { %p112_p3 = scmp.eq.s32.totalorder %s482_s17, 3  ;;  %p483_p5 = scmp.ge.s32.totalorder %s718_s15, 1 }
   0x9   : > { %p781_p4 = por %p922_p1, %p40_p0  ;;  %p119_p7 = scmp.lt.s32.totalorder %s718_s15, 5 }
   0xa   : > { %p786_p6 = por %p112_p3, %p40_p0  ;;  %s720_s21 = smov [#allocation5]  }
   0xb   : > { %s926_s18 = scalar_select %p781_p4, 1, 0 }
   0xc   : > { %s927_s19 = scalar_select %p786_p6, 1, 0 }
   0xd   : > { %p791_p8 = pnand %p483_p5, %p119_p7  ;;  %s131_s22 = sshll.u32 %s720_s21, 4  ;;  %s132_s22 = int_to_ptr.vmem [resolvable:$true] %s131_s22 }
   0xe   : > { %s804_s24 = sadd.s32 1, %s718_s15   ;;  %s27_s25 = sadd.s32 1, %s714_s14 }
   0xf   : > { %s928_s20 = scalar_select %p791_p8, 1, 0 }
  0x10   : > { %p536_p9 = pneg %p791_p8  ;;  %s24_s26 = ssub.s32 %s718_s15, %s804_s24 }
  0x11   : > { %s607_s27 = scalar_lea.vmem %s132_s22, 256  ;;  %p615_p3 = scmp.lt.s32.totalorder %s132_s22, %s132_s22 }
  0x12   : > { %p799_p10 = pnand %p536_p9, %p922_p1  ;;  %p608_p12 = scmp.ne.s32.totalorder %s132_s22, %s607_s27 }
  0x13   : > { %p616_p5 = scmp.lt.s32.totalorder %s607_s27, %s607_s27 }
  0x14   : > { %p598_p11 = pneg %p799_p10 }
  0x15   : > { %p617_p7 = por %p616_p5, %p615_p3 }
  0x16   : > { %p610_p13 = pnand %p608_p12, %p598_p11 }
  0x18   : > { %p611_p0 = pneg %p610_p13 }
  0x1a   : > { %p618_p2 = pnand %p617_p7, %p611_p0 }
  0x1c   : > { %621 = shalt.err (!%p618_p2)
}
  0x1d   : > { %s721_s28 = smov 128   ;;  %s722_s29 = smov 8  }
  0x1e   : > { %539 = dma.hbm_to_vmem [thread:$0]  (!%p799_p10), %s919_s1, 256, %s132_s22, [#allocation6], %s721_s28, %s721_s28, %s722_s29  }
  0x1f   : > { %p25_p9 = scmp.eq.s32.totalorder %s24_s26, 0  ;;  %p34_p11 = scmp.ne.s32.totalorder %s714_s14, %s710_s13 }
  0x20   : > { %p35_p12 = scmp.eq.s32.totalorder %s718_s15, 0  ;;  %p549_p2 = scmp.lt.s32.totalorder %s718_s15, 4 }
  0x21   : > { %s821_s5 = scalar_select %p25_p9, %s714_s14, %s27_s25  }
  0x22   : > { %p36_p13 = por %p35_p12, %p34_p11  ;;  %p930_p0 = scmp.eq.s32.totalorder %s772_s16, 3 }
  0x23   : > { %s148_s7 = sand.u32 1, %s714_s14   ;;  %s487_s8 = sshll.u32 %s718_s15, 7 }
  0x24   : > { %p825_p3 = por %p930_p0, %p34_p11  ;;  %s486_s9 = sshll.u32 %s148_s7, 3 }
  0x25   : > { %s834_s17 = scalar_lea.hbm %s918_s0, %s487_s8  ;;  %s152_s21 = scalar_lea.vmem [#allocation2], %s486_s9 }
  0x26   : > { %s931_s6 = scalar_select %p825_p3, 1, 0 }
  0x27   : > { %s159_s22 = sshll.u32 %s152_s21, 4  ;;  %p836_p10 = pnand %p549_p2, %p36_p13  ;;  %s160_s22 = int_to_ptr.vmem [resolvable:$true] %s159_s22 }
  0x28   : > { %s149_s25 = scalar_lea.sflag [#allocation3], %s148_s7  ;;  %s622_s26 = scalar_lea.hbm %s834_s17, 128 }
  0x29   : > { %p623_p5 = scmp.ne.s32.totalorder %s834_s17, %s622_s26  ;;  %p624_p7 = pneg %p836_p10 }
  0x2a   : > { %s627_s29 = scalar_lea.hbm %s918_s0, 512  ;;  %p628_p12 = scmp.lt.s32.totalorder %s834_s17, %s918_s0 }
  0x2b   : > { %p625_p9 = pnand %p624_p7, %p623_p5  ;;  %p629_p2 = scmp.lt.s32.totalorder %s627_s29, %s622_s26 }
  0x2d   : > { %p626_p11 = pneg %p625_p9  ;;  %p630_p13 = por %p629_p2, %p628_p12 }
  0x2f   : > { %p631_p0 = pnand %p630_p13, %p626_p11 }
  0x31   : > { %634 = shalt.err (!%p631_p0)
}
  0x32   : > { %s635_s8 = scalar_lea.vmem %s160_s22, 128  ;;  %s723_s7 = smov [#allocation2]  }
  0x33   : > { %p636_p1 = scmp.ne.s32.totalorder %s160_s22, %s635_s8  ;;  %s640_s9 = sshll.u32 %s723_s7, 4  ;;  %s641_s9 = int_to_ptr.vmem [resolvable:$false] %s640_s9 }
  0x34   : > { %s642_s10 = scalar_lea.vmem %s641_s9, 256  ;;  %p643_p5 = scmp.lt.s32.totalorder %s160_s22, %s641_s9 }
  0x35   : > { %p638_p6 = pnand %p636_p1, %p624_p7  ;;  %p644_p9 = scmp.lt.s32.totalorder %s642_s10, %s635_s8 }
  0x37   : > { %p639_p3 = pneg %p638_p6  ;;  %p645_p4 = por %p644_p9, %p643_p5 }
  0x39   : > { %p646_p8 = pnand %p645_p4, %p639_p3 }
  0x3b   : > { %649 = shalt.err (!%p646_p8)
}
  0x3c   : > { %543 = dma.hbm_to_vmem [thread:$0]  (!%p836_p10), %s834_s17, 128, %s160_s22, %s149_s25  }
  0x3d   : > { %p933_p11 = scmp.ne.s32.totalorder %s928_s20, 0 }
  0x3e   : > { %s857_s11 = sand.u32 (!%p933_p11), 1, %s710_s13   ;;  %p934_p1 = scmp.ne.s32.totalorder (!%p933_p11), %s926_s18, 0 }
  0x3f   : > { %168 = sbr.rel (%p933_p11) target bundleno = 724 (0x2d4), region = 32  ;;  %s489_s21 = sshll.u32 (!%p933_p11), %s857_s11, 3 }
  0x40   : > { %s171_s26 = scalar_lea.sflag (!%p933_p11), [#allocation3], %s857_s11  ;;  %s174_s27 = scalar_lea.vmem (!%p933_p11), [#allocation2], %s489_s21 }
  0x44   : > { %693 = dma.done.wait (%p934_p1), %s171_s26, 128  }
  0x45   : > { %695 = vsyncadd (%p934_p1), %s171_s26, 4294967168  ;;  %p935_p4 = scmp.eq.s32.totalorder %s772_s16, 0 }
  0x47   : > { %697 = dma.done.wait (%p935_p4), [#allocation6], 256   ;;  %p936_p6 = pmov %p935_p4 }
  0x48   : > { %v724_v0 = vmov 0.0   ;;  %vm725_vm0 = vmmov 0   ;;  %v726_v1 = vmov 0   ;;  %v215_v2 = vld [vmem:[%s174_s27] sm:$0xff]  ;;  %s727_s18 = smov 127   ;;  %s728_s22 = smov 1   ;;  %v201_v4 = vlaneseq }
  0x49   : > { %699 = vsyncadd (%p936_p6), [#allocation6], 4294967040  ;;  %510 = vmatprep.subr.mxu0 %v724_v0  ;;  %516 = vmatprep.mubr.msk.f32.mxu0 %vm725_vm0, %v724_v0  ;;  %v214_v3 = vld [vmem:[%s920_s2] sm:$0xff]  ;;  %v211_v9 = vld [vmem:[#allocation5] sm:$0xff]  ;;  %vm227_vm3 = vcmask 195584   ;;  %v729_v12 = vmov 1  }
  0x4a   : > { %593 = vset.pattern.permute.xlu1 %v726_v1  ;;  %519 = vmatprep.subr.mxu1 %v724_v0  ;;  %v202_v5 = vand.u32 127, %v201_v4  ;;  %v213_v18 = vld [vmem:[#allocation5 + $0x8] sm:$0xff]  ;;  %s499_s23 = sshll.u32 %s772_s16, 7  ;;  %s200_s25 = scalar_lea.vmem [#allocation7], %s489_s21 }
  0x4b   : > { %525 = vmatprep.mubr.msk.f32.mxu1 %vm725_vm0, %v724_v0  ;;  %219 = vrot.lane.b32.xlu0 %v215_v2, %s727_s18  ;;  %s402_s28 = sshll.u32 %s200_s25, 4  ;;  %s400_s4 = scalar_lea.hbm %s921_s3, %s499_s23  ;;  %s403_s28 = int_to_ptr.vmem [resolvable:$true] %s402_s28 }
  0x4c   : > { %224 = vperm.xlu1 %593, %v214_v3   ;;  %v207_v6 = vadd.s32 1, %v202_v5  ;;  %v203_v7 = vadd.s32 4294967295, %v202_v5  ;;  %595 = vset.pattern.permute.xlu0 %v729_v12  ;;  %s389_s8 = scalar_lea.sflag [#allocation4], %s857_s11  ;;  %s650_s7 = scalar_lea.vmem %s403_s28, 128 }
  0x4d   : > { %p651_p8 = scmp.ne.s32.totalorder %s403_s28, %s650_s7  ;;  %p937_p3 = scmp.ne.s32.totalorder %s931_s6, 0 }
  0x4e   : > { %vm209_vm1 = vcmp.lt.s32.totalorder %v207_v6, 128  ;;  %vm204_vm2 = vcmp.ge.s32.totalorder %v203_v7, 0  ;;  %s730_s9 = smov [#allocation7]  }
  0x4f   : > { %216 = vrot.lane.b32.xlu0 %v215_v2, %s728_s22  ;;  %p652_p10 = pnand %p651_p8, %p937_p3  ;;  %s654_s10 = sshll.u32 %s730_s9, 4  ;;  %s655_s10 = int_to_ptr.vmem [resolvable:$false] %s654_s10 }
  0x50   : > { %594 = vset.pattern.permute.xlu1 %v729_v12  ;;  %s656_s16 = scalar_lea.vmem %s655_s10, 256  ;;  %p657_p12 = scmp.lt.s32.totalorder %s403_s28, %s655_s10 }
  0x51   : > { %p653_p7 = pneg %p652_p10  ;;  %p658_p2 = scmp.lt.s32.totalorder %s656_s16, %s650_s7 }
  0x53   : > { %p659_p13 = por %p658_p2, %p657_p12 }
  0x55   : > { %p660_p0 = pnand %p659_p13, %p653_p7 }
  0xbd   : > { %v220_v8 = vpop.permute.xlu0 %219 }
  0xbe   : > { %511 = vmatpush3.msk.msra.mxu0 %vm209_vm1, %v220_v8 }
  0xbf   : > { %512 = vmatprep.subr.mxu0 %v724_v0 }
  0xc0   : > { %513 = vmatpush3.msra.mxu0 %v215_v2 }
  0xc1   : > { %514 = vmatprep.subr.mxu0 %v724_v0  ;;  %v217_v10 = vpop.permute.xlu0 %216 }
  0xc2   : > { %515 = vmatpush3.msk.msra.mxu0 %vm204_vm2, %v217_v10 }
  0xc3   : > { %517 = vmatmul.mubr.msk.f32.vlgmr.msra.gmra.mxu0 %vm227_vm3, %v211_v9 }
  0xc7   : > { %v225_v11 = vpop.permute.xlu1 %224 }
 0x183   : > { %v297_v13 = vpop.f32.mrf.mxu0 }
 0x184   : > { %v298_v14 = vadd.f32 %v297_v13, %v225_v11 }
 0x185   : > { %v518_v15 = vpop.f32.mrf.mxu0 }
 0x186   : > { %v301_v16 = vmax.f32 %v298_v14, 0.0 }
 0x188   : > { %302 = vrot.lane.b32.xlu0 %v301_v16, %s728_s22  ;;  %305 = vrot.lane.b32.xlu1 %v301_v16, %s727_s18 }
 0x18c   : > { %309 = vperm.xlu1 %594, %v214_v3  }
 0x1fa   : > { %v306_v17 = vpop.permute.xlu1 %305  ;;  %v303_v19 = vpop.permute.xlu0 %302 }
 0x1fb   : > { %520 = vmatpush3.msk.msra.mxu1 %vm209_vm1, %v306_v17 }
 0x1fc   : > { %521 = vmatprep.subr.mxu1 %v724_v0 }
 0x1fd   : > { %522 = vmatpush3.msra.mxu1 %v301_v16 }
 0x1fe   : > { %523 = vmatprep.subr.mxu1 %v724_v0 }
 0x1ff   : > { %524 = vmatpush3.msk.msra.mxu1 %vm204_vm2, %v303_v19 }
 0x200   : > { %526 = vmatmul.mubr.msk.f32.vlgmr.msra.gmra.mxu1 %vm227_vm3, %v213_v18 }
 0x207   : > { %v310_v20 = vpop.permute.xlu1 %309 }
 0x2c0   : > { %v381_v21 = vpop.f32.mrf.mxu1 }
 0x2c1   : > { %v382_v22 = vadd.f32 %v381_v21, %v310_v20 }
 0x2c2   : > { %v527_v23 = vpop.f32.mrf.mxu1 }
 0x2c3   : > { %v385_v24 = vadd.f32 %v382_v22, %v215_v2 }
 0x2c5   : > { %v386_v25 = vmax.f32 %v385_v24, 0.0 }
 0x2c7   : > { %387 = vst [vmem:[%s200_s25] sm:$0xff] %v386_v25 }
 0x2c8   : > { %663 = shalt.err (!%p660_p0)
}
 0x2c9   : > { %s664_s21 = scalar_lea.hbm %s400_s4, 128  ;;  %s668_s27 = scalar_lea.hbm %s921_s3, 512 }
 0x2ca   : > { %p665_p5 = scmp.ne.s32.totalorder %s400_s4, %s664_s21  ;;  %p669_p1 = scmp.lt.s32.totalorder %s400_s4, %s921_s3 }
 0x2cb   : > { %p670_p4 = scmp.lt.s32.totalorder %s668_s27, %s664_s21 }
 0x2cc   : > { %p666_p9 = pnand %p665_p5, %p937_p3 }
 0x2cd   : > { %p671_p6 = por %p670_p4, %p669_p1 }
 0x2ce   : > { %p667_p11 = pneg %p666_p9 }
 0x2d0   : > { %p672_p8 = pnand %p671_p6, %p667_p11 }
 0x2d2   : > { %675 = shalt.err (!%p672_p8)
}
 0x2d3   : > { %534 = dma.vmem_to_hbm [thread:$0]  (%p937_p3), %s403_s28, 128, %s400_s4, %s389_s8  }
 0x2d4 PF: > { %p551_p10 = scmp.ge.s32.totalorder %s718_s15, 2  ;;  %s414_s18 = sand.u32 1, %s706_s12  }
 0x2d5   : > { %p938_p7 = scmp.ne.s32.totalorder %s927_s19, 0  ;;  %s415_s22 = scalar_lea.sflag [#allocation4], %s414_s18 }
 0x2d7   : > { %p545_p12 = pnand %p551_p10, %p938_p7 }
 0x2d9   : > { %p546_p2 = pneg %p545_p12 }
 0x2db   : > { %701 = dma.done.wait (%p546_p2), %s415_s22, 128  }
 0x2dc   : > { %703 = vsyncadd (%p546_p2), %s415_s22, 4294967168  ;;  %p17_p13 = scmp.ge.s32.totalorder %s804_s24, 6   ;;  %s939_s12 = smov %s710_s13 }
 0x2dd   : > { %s940_s13 = smov %s714_s14  ;;  %s941_s14 = smov %s821_s5 }
 0x2de   : > { %s942_s15 = smov %s804_s24  ;;  %19 = sbr.rel (!%p17_p13) target bundleno = 6 (0x6), region = 82 }
 0x2e3   :  { %420 = vsyncpa [#allocation3], 1 }
 0x2e4   :  { %422 = vsyncpa [#allocation3 + $0x1], 1 }
 0x2e5   :  { %423 = vsyncpa [#allocation6], 1 }
 0x2e6   :  { %424 = vsyncpa [#allocation4], 1 }
 0x2e7   :  { %426 = vsyncpa [#allocation4 + $0x1], 1 }

</bundles_post_ra>
